<compile_context>
chip_gen: v7x
topology: tpu7x:2x2x1
jax: 0.10.0
libtpu: 0.0.40
codegen_flags: <defaults>
</compile_context>

<pallas_src>
import jax
import jax.numpy as jnp
from jax.experimental import pallas as pl
from jax.experimental.pallas import tpu as pltpu


def _round_up(x, m):
    return ((x + m - 1) // m) * m


def causal_gated_conv_block(x, w_conv, b_conv, w_gate, b_gate,
                            kernel_size, fstride, t_chunk=None):
    B, C_in, T, F = x.shape
    kt, kf = kernel_size
    C_out = w_conv.shape[0]
    F_out = (F - kf) // fstride + 1

    LANES = 128
    # conv|gate packing: single 128-lane fused N when C_out <= 64, else two c_half halves.
    c_half = LANES // 2 if C_out <= LANES // 2 else _round_up(C_out, LANES)
    n_pad = 2 * c_half                      # fused matmul N: [conv | gate]
    f_pad = _round_up(F_out, 8)             # output freq positions per frame (sublane-aligned)
    K1 = kf * C_in                          # contraction width per time tap
    K = kt * K1                             # fully merged contraction width
    # Merge all kt taps into one matmul when the merged K still fits one MXU depth pass;
    # the kt x duplication of a <=128-lane input stream is negligible next to the output
    # stream.  For large K1 keep the halo layout + per-tap loop (no input duplication).
    merge_taps = K <= 128

    # ---------------- tiling ----------------
    if t_chunk is None:
        t_chunk = max(1, min(T, 1024 // f_pad))        # ~1k output rows per tile
        def _vmem_est(tc):
            rows_out = tc * f_pad
            rows_in = rows_out if merge_taps else (tc + kt - 1) * f_pad
            k_in = K if merge_taps else K1
            return (2 * (rows_in * k_in + rows_out * c_half) * 2   # double-buffered bf16 in/out
                    + K * n_pad * 2                                # resident fused weights
                    + 6 * rows_out * n_pad * 4)                    # f32 acc + epilogue temps
        while t_chunk > 1 and _vmem_est(t_chunk) > 24 * 1024 * 1024:
            t_chunk //= 2
        # v7x megacore: keep at least 2 parallel grid steps when possible.
        if B == 1 and T > 1 and -(-T // t_chunk) < 2:
            t_chunk = -(-T // 2)
    t_chunk = max(1, min(int(t_chunk), T))
    n_chunks = -(-T // t_chunk)
    T_ceil = n_chunks * t_chunk
    fpc = t_chunk + kt - 1                   # frames per chunk incl. causal halo (unmerged path)
    R_out = t_chunk * f_pad                  # output rows per block
    R_in = R_out if merge_taps else fpc * f_pad
    K_in = K if merge_taps else K1

    # ------------- wrapper glue: one transpose + one pad + ONE gather -------------
    # Channels-last bf16; causal front pad (kt-1 zero frames) + zero tail to whole chunks.
    x_cl = jnp.transpose(x, (0, 2, 3, 1)).astype(jnp.bfloat16)               # [B, T, F, C_in]
    x_cl = jnp.pad(x_cl, ((0, 0), (kt - 1, T_ceil - T), (0, 0), (0, 0)))     # [B, T_tot, F, C_in]
    T_tot = T_ceil + kt - 1
    x_flat = x_cl.reshape(B, T_tot * F, C_in)

    # Freq positions: padded positions are clamped duplicates (their outputs are sliced off,
    # so no in-kernel masking is needed).  df = freq taps.
    fo = fstride * jnp.minimum(jnp.arange(f_pad), F_out - 1)                 # [f_pad]
    df = jnp.arange(kf)                                                      # [kf]
    if merge_taps:
        t0 = jnp.arange(n_chunks)[:, None] * t_chunk + jnp.arange(t_chunk)[None, :]
        # [n_chunks, t_chunk, f_pad, kt, kf] flat (time, freq) gather indices; K order (dt,df,ci).
        idx = ((t0[:, :, None, None, None] + jnp.arange(kt)[None, None, None, :, None]) * F
               + fo[None, None, :, None, None] + df[None, None, None, None, :])
        xc = jnp.take(x_flat, idx, axis=1).reshape(B, n_chunks, R_out, K)
    else:
        t0 = jnp.arange(n_chunks)[:, None] * t_chunk + jnp.arange(fpc)[None, :]
        idx = t0[:, :, None, None] * F + fo[None, None, :, None] + df[None, None, None, :]
        xc = jnp.take(x_flat, idx, axis=1).reshape(B, n_chunks, R_in, K1)
        # TODO(synk): fold this frequency-tap gather into the kernel with strided pl.ds reads
        # on a raw channels-last chunk to remove the remaining kf/fstride input inflation.

    # Fused conv|gate weights; K order = (dt, df, c_in) matches the gathered rows.
    def _prep(w):                                                            # -> [kt, K1, c_half]
        wp = jnp.transpose(w, (2, 3, 1, 0)).reshape(kt, K1, C_out)
        return jnp.pad(wp, ((0, 0), (0, 0), (0, c_half - C_out)))
    w_fused = jnp.concatenate([_prep(w_conv), _prep(w_gate)], axis=2).astype(jnp.bfloat16)
    if merge_taps:
        w_fused = w_fused.reshape(K, n_pad)
    b_fused = jnp.zeros((1, n_pad), jnp.float32)
    b_fused = b_fused.at[0, :C_out].set(b_conv.astype(jnp.float32))
    b_fused = b_fused.at[0, c_half:c_half + C_out].set(b_gate.astype(jnp.float32))

    # ------------------------------------ kernel ------------------------------------
    def _epilogue(acc, o_ref):
        # acc: [R_out, n_pad] f32 = conv|gate + bias.
        if n_pad == LANES:
            conv = acc
            gate = pltpu.roll(acc, shift=c_half, axis=1)     # gate lanes -> [0, c_half) (XLU)
        else:
            conv = acc[:, :c_half]
            gate = acc[:, c_half:]
        # sigmoid(gate)*conv with sigmoid = 0.5*tanh(0.5*g)+0.5 (one EUP op), then ELU(a=1).
        y = (0.5 * jnp.tanh(0.5 * gate) + 0.5) * conv
        y = jnp.where(y > 0.0, y, jnp.exp(jnp.minimum(y, 0.0)) - 1.0)
        if n_pad == LANES:
            y = y[:, :c_half]
        o_ref[...] = y.astype(o_ref.dtype)                   # bf16, c_half-wide writeback

    if merge_taps:
        def kernel(x_ref, w_ref, b_ref, o_ref):
            # Single fused (conv|gate) matmul over the merged K = kt*kf*C_in, f32 accumulate.
            acc = jnp.dot(x_ref[...], w_ref[...],
                          preferred_element_type=jnp.float32) + b_ref[...]
            _epilogue(acc, o_ref)
    else:
        def kernel(x_ref, w_ref, b_ref, o_ref):
            # Large-K1 fallback: per-tap matmuls over aligned sublane slabs of the halo'd block.
            # TODO(synk): on v7x use explicit MRB accumulation (pltpu.matmul_push_rhs /
            # matmul_acc_lhs) here to avoid the f32 partial-sum round trips.
            acc = jnp.dot(x_ref[pl.ds(0, R_out), :], w_ref[0],
                          preferred_element_type=jnp.float32)
            for dt in range(1, kt):
                acc = acc + jnp.dot(x_ref[pl.ds(dt * f_pad, R_out), :], w_ref[dt],
                                    preferred_element_type=jnp.float32)
            _epilogue(acc + b_ref[...], o_ref)

    w_spec = (pl.BlockSpec((K, n_pad), lambda b, j: (0, 0)) if merge_taps
              else pl.BlockSpec((kt, K1, n_pad), lambda b, j: (0, 0, 0)))

    out = pl.pallas_call(
        kernel,
        out_shape=jax.ShapeDtypeStruct((B, n_chunks, R_out, c_half), jnp.bfloat16),
        grid_spec=pltpu.PrefetchScalarGridSpec(
            num_scalar_prefetch=0,
            grid=(B, n_chunks),
            in_specs=[
                pl.BlockSpec((None, None, R_in, K_in), lambda b, j: (b, j, 0, 0)),
                # Constant index maps -> weights/bias stay VMEM-resident (no re-DMA per step).
                w_spec,
                pl.BlockSpec((1, n_pad), lambda b, j: (0, 0)),
            ],
            out_specs=pl.BlockSpec((None, None, R_out, c_half), lambda b, j: (b, j, 0, 0)),
        ),
        compiler_params=pltpu.CompilerParams(
            dimension_semantics=("parallel", "parallel"),
            vmem_limit_bytes=32 * 1024 * 1024),
    )(xc, w_fused, b_fused)

    # [B, n_chunks, t_chunk*f_pad, c_half] -> [B, T, F_out, C_out] -> NCHW (module layout).
    out = out.reshape(B, T_ceil, f_pad, c_half)[:, :T, :F_out, :C_out]
    # TODO(synk): consumers that accept channels-last bf16 can take `out` directly and skip
    # this transpose + cast (an extra HBM round trip outside the kernel).
    return jnp.transpose(out, (0, 3, 1, 2)).astype(x.dtype)


def _reference(x, w_conv, b_conv, w_gate, b_gate, kernel_size, fstride):
    """Pure-JAX replica of the PyTorch forward (for verification)."""
    kt, kf = kernel_size
    dn = jax.lax.conv_dimension_numbers(x.shape, w_conv.shape, ("NCHW", "OIHW", "NCHW"))
    pad = [(kt - 1, kt - 1), (0, 0)]
    conv = jax.lax.conv_general_dilated(
        x, w_conv, (1, fstride), pad, dimension_numbers=dn) + b_conv[None, :, None, None]
    gate = jax.lax.conv_general_dilated(
        x, w_gate, (1, fstride), pad, dimension_numbers=dn) + b_gate[None, :, None, None]
    y = jax.nn.sigmoid(gate) * conv
    y = y[:, :, :conv.shape[2] - kt + 1, :]                   # causal slice -> first T frames
    return jnp.where(y > 0, y, jnp.expm1(y))                  # ELU(alpha=1)


if __name__ == "__main__":
    # Small shapes consistent with the module: x = [B, C_in, T, F]
    B, C_in, C_out, T, F = 2, 4, 6, 16, 16
    kernel_size = (3, 3)
    fstride = 2

    key = jax.random.PRNGKey(0)
    kx, kwc, kbc, kwg, kbg = jax.random.split(key, 5)
    x = jax.random.normal(kx, (B, C_in, T, F), dtype=jnp.float32)
    w_conv = 0.1 * jax.random.normal(kwc, (C_out, C_in) + kernel_size, dtype=jnp.float32)
    b_conv = 0.1 * jax.random.normal(kbc, (C_out,), dtype=jnp.float32)
    w_gate = 0.1 * jax.random.normal(kwg, (C_out, C_in) + kernel_size, dtype=jnp.float32)
    b_gate = 0.1 * jax.random.normal(kbg, (C_out,), dtype=jnp.float32)

    ref = _reference(x, w_conv, b_conv, w_gate, b_gate, kernel_size, fstride)

    # Default chunking (single chunk for this small T).
    out = causal_gated_conv_block(x, w_conv, b_conv, w_gate, b_gate, kernel_size, fstride)
    out = jax.block_until_ready(out)
    assert out.shape == ref.shape, (out.shape, ref.shape)
    # bf16 matmul inputs + bf16 output store -> compare at bf16-appropriate tolerance.
    assert jnp.allclose(out, ref, atol=3e-2, rtol=3e-2), float(jnp.max(jnp.abs(out - ref)))

    # Also exercise multi-chunk tiling + tail-time padding (T not divisible by t_chunk).
    out2 = causal_gated_conv_block(x, w_conv, b_conv, w_gate, b_gate, kernel_size, fstride,
                                   t_chunk=5)
    out2 = jax.block_until_ready(out2)
    assert out2.shape == ref.shape, (out2.shape, ref.shape)
    assert jnp.allclose(out2, ref, atol=3e-2, rtol=3e-2), float(jnp.max(jnp.abs(out2 - ref)))

    print("KERNEL_OK")
</pallas_src>

<mosaic_0001>
module attributes {stable_mosaic.version = 11 : i64} {
  func.func @kernel(%arg0: i32, %arg1: i32, %arg2: memref<1x1x128x36xbf16, #tpu.memory_space<vmem>>, %arg3: memref<36x128xbf16, #tpu.memory_space<vmem>>, %arg4: memref<1x128xf32, #tpu.memory_space<vmem>>, %arg5: memref<1x1x128x64xbf16, #tpu.memory_space<vmem>>) attributes {dimension_semantics = [#tpu.dimension_semantics<parallel>, #tpu.dimension_semantics<parallel>], iteration_bounds = array<i64: 2, 1>, scalar_prefetch = 0 : i64, scratch_operands = 0 : i64, tpu.core_type = #tpu.core_type<tc>, window_params = [{transform_indices = @transform_0, window_bounds = array<i64: 1, 1, 128, 36>}, {pipeline_mode = #tpu.pipeline_mode<synchronous>, transform_indices = @transform_1, window_bounds = array<i64: 36, 128>}, {pipeline_mode = #tpu.pipeline_mode<synchronous>, transform_indices = @transform_2, window_bounds = array<i64: 1, 128>}, {transform_indices = @transform_3, window_bounds = array<i64: 1, 1, 128, 64>}]} {
    %c0 = arith.constant 0 : index
    %c0_0 = arith.constant 0 : index
    %c0_1 = arith.constant 0 : index
    %c0_2 = arith.constant 0 : index
    %0 = vector.load %arg2[%c0, %c0_0, %c0_1, %c0_2] : memref<1x1x128x36xbf16, #tpu.memory_space<vmem>>, vector<1x1x128x36xbf16>
    %1 = vector.shape_cast %0 : vector<1x1x128x36xbf16> to vector<128x36xbf16>
    %c0_3 = arith.constant 0 : index
    %c0_4 = arith.constant 0 : index
    %2 = vector.load %arg3[%c0_3, %c0_4] : memref<36x128xbf16, #tpu.memory_space<vmem>>, vector<36x128xbf16>
    %cst = arith.constant dense<0.000000e+00> : vector<128x128xf32>
    %3 = tpu.matmul %1, %2, %cst {dimension_numbers = #tpu.dot_dimension_numbers<[1], [0], [0], [1], [0, 0, 1, 1], [], []>} : vector<128x36xbf16>, vector<36x128xbf16>, vector<128x128xf32> -> vector<128x128xf32>
    %c0_5 = arith.constant 0 : index
    %c0_6 = arith.constant 0 : index
    %4 = vector.load %arg4[%c0_5, %c0_6] : memref<1x128xf32, #tpu.memory_space<vmem>>, vector<1x128xf32>
    %5 = vector.broadcast %4 : vector<1x128xf32> to vector<128x128xf32>
    %6 = arith.addf %3, %5 : vector<128x128xf32>
    %c64_i32 = arith.constant 64 : i32
    %7 = tpu.dynamic_rotate %6 by %c64_i32 dim 1 : vector<128x128xf32>, i32 -> vector<128x128xf32>
    %cst_7 = arith.constant 5.000000e-01 : f32
    %8 = vector.broadcast %cst_7 : f32 to vector<128x128xf32>
    %9 = arith.mulf %8, %7 : vector<128x128xf32>
    %10 = math.tanh %9 : vector<128x128xf32>
    %cst_8 = arith.constant 5.000000e-01 : f32
    %11 = vector.broadcast %cst_8 : f32 to vector<128x128xf32>
    %12 = arith.mulf %11, %10 : vector<128x128xf32>
    %cst_9 = arith.constant 5.000000e-01 : f32
    %13 = vector.broadcast %cst_9 : f32 to vector<128x128xf32>
    %14 = arith.addf %12, %13 : vector<128x128xf32>
    %15 = arith.mulf %14, %6 : vector<128x128xf32>
    %cst_10 = arith.constant 0.000000e+00 : f32
    %16 = vector.broadcast %cst_10 : f32 to vector<128x128xf32>
    %17 = arith.cmpf ogt, %15, %16 : vector<128x128xf32>
    %cst_11 = arith.constant 0.000000e+00 : f32
    %18 = vector.broadcast %cst_11 : f32 to vector<128x128xf32>
    %19 = arith.minimumf %15, %18 : vector<128x128xf32>
    %20 = math.exp %19 : vector<128x128xf32>
    %cst_12 = arith.constant 1.000000e+00 : f32
    %21 = vector.broadcast %cst_12 : f32 to vector<128x128xf32>
    %22 = arith.subf %20, %21 : vector<128x128xf32>
    %23 = arith.select %17, %15, %22 : vector<128x128xi1>, vector<128x128xf32>
    %24 = vector.extract_strided_slice %23 {offsets = [0, 0], sizes = [128, 64], strides = [1, 1]} : vector<128x128xf32> to vector<128x64xf32>
    %25 = arith.truncf %24 : vector<128x64xf32> to vector<128x64xbf16>
    %c0_13 = arith.constant 0 : index
    %c0_14 = arith.constant 0 : index
    %c0_15 = arith.constant 0 : index
    %c0_16 = arith.constant 0 : index
    %26 = vector.load %arg5[%c0_13, %c0_14, %c0_15, %c0_16] : memref<1x1x128x64xbf16, #tpu.memory_space<vmem>>, vector<1x1x128x64xbf16>
    %27 = vector.shape_cast %26 : vector<1x1x128x64xbf16> to vector<128x64xbf16>
    %28 = vector.shape_cast %25 : vector<128x64xbf16> to vector<1x1x128x64xbf16>
    tpu.vector_store %arg5[%c0_13, %c0_14, %c0_15, %c0_16], %28 {strides = array<i32>} : memref<1x1x128x64xbf16, #tpu.memory_space<vmem>>, vector<1x1x128x64xbf16>,
    return
  }
  func.func @transform_0(%arg0: i32, %arg1: i32) -> (i32, i32, i32, i32) {
    %c0_i32 = arith.constant 0 : i32
    %c0_i32_0 = arith.constant 0 : i32
    %c0_i32_1 = arith.constant 0 : i32
    return %arg0, %arg1, %c0_i32, %c0_i32_0 : i32, i32, i32, i32
  }
  func.func @transform_1(%arg0: i32, %arg1: i32) -> (i32, i32) {
    %c0_i32 = arith.constant 0 : i32
    %c0_i32_0 = arith.constant 0 : i32
    %c0_i32_1 = arith.constant 0 : i32
    return %c0_i32, %c0_i32_0 : i32, i32
  }
  func.func @transform_2(%arg0: i32, %arg1: i32) -> (i32, i32) {
    %c0_i32 = arith.constant 0 : i32
    %c0_i32_0 = arith.constant 0 : i32
    %c0_i32_1 = arith.constant 0 : i32
    return %c0_i32, %c0_i32_0 : i32, i32
  }
  func.func @transform_3(%arg0: i32, %arg1: i32) -> (i32, i32, i32, i32) {
    %c0_i32 = arith.constant 0 : i32
    %c0_i32_0 = arith.constant 0 : i32
    %c0_i32_1 = arith.constant 0 : i32
    return %arg0, %arg1, %c0_i32, %c0_i32_0 : i32, i32, i32, i32
  }
}

</mosaic_0001>

<bundles_post_ra>
// kernel: tpu_custom_call.1
= control target key start
LH: loop header
LB: loop body
LE: loop exit
PB: predicated region body
PF: predicated region fallthrough
CT: control target
= control target key end

     0   :  { %s1065_s12 = smov 0   ;;  %s1067_s13 = smov 0   ;;  %s1312_s0 = inlined_call_operand.vmem [shape: bf16[2,1,128,36], index: 0, kind: input, shape index: {}]   ;;  %s1313_s1 = inlined_call_operand.vmem [shape: bf16[36,128], index: 1, kind: input, shape index: {}]   ;;  %s1314_s2 = inlined_call_operand.vmem [shape: f32[1,128], index: 2, kind: input, shape index: {}]   ;;  %s1315_s3 = inlined_call_operand.vmem [shape: bf16[2,1,128,64], index: 3, kind: output, shape index: {}]  }
   0x1   :  { %s1069_s14 = smov 0  }
   0x2 LB: > { %s25_s15 = sadd.s32 1, %s1038_s13  ;;  %p802_p0 = scmp.ge.s32.totalorder %s1042_s14, 1  ;;  %s1042_s14 = sphi %s1069_s14, %s13_s14   ;;  %s1038_s13 = sphi %s1067_s13, %s1317_s13   ;;  %s1034_s12 = sphi %s1065_s12, %s1316_s12  }
   0x3   : > { %p27_p1 = scmp.ge.s32.totalorder %s25_s15, 2  ;;  %p157_p2 = scmp.lt.s32.totalorder %s1042_s14, 3 }
   0x5   : > { %s1319_s15 = smov (%p27_p1, %s25_s15), 0  ;;  %p158_p3 = pnand %p802_p0, %p157_p2 }
   0x6   : > { %v945_v0 = vld [vmem:[%s1313_s1] sm:$0xff] (!%p158_p3)   ;;  %v946_v1 = vld [vmem:[%s1313_s1 + $0x8] sm:$0xff] (!%p158_p3)   ;;  %p189_p4 = scmp.lt.s32.totalorder (!%p158_p3), %s1034_s12, 1  ;;  %v947_v2 = vld [vmem:[%s1313_s1 + $0x10] ss:$0 sps:$4 sm:$0x33] (!%p158_p3)  }
   0x7   : > { %161 = sbr.rel (%p158_p3) target bundleno = 431 (0x1af), region = 32  ;;  %890 = vmatprep.subr.bf16.mxu0 (!%p158_p3), %v945_v0  ;;  %912 = vmatprep.subr.bf16.mxu1 (!%p158_p3), %v945_v0  ;;  %vm316_vm0 = vcmask (!%p158_p3), 1041408   ;;  %vm291_vm1 = vcmask (!%p158_p3), 293888   ;;  %v807_v12 = vld [vmem:[%s1314_s2] ss:$0 sm:$0xff] (!%p158_p3)  ;;  %s1044_s28 = smov (!%p158_p3), 64  }
   0x8   : > { %891 = vmatpush3.bf16.msra.mxu0 (!%p158_p3), %v945_v0  ;;  %915 = vmatpush3.bf16.msra.mxu1 (!%p158_p3), %v945_v0  ;;  %v318_v4 = vsel (!%p158_p3), %vm316_vm0, %v947_v2, 0  ;;  %vm689_vm2 = vcmask (!%p158_p3), 519168  }
   0x9   : > { %892 = vmatprep.subr.bf16.mxu0 (!%p158_p3), %v946_v1  ;;  %913 = vmatprep.subr.bf16.mxu1 (!%p158_p3), %v946_v1 }
   0xc   : > { %893 = vmatpush3.bf16.msra.mxu0 (!%p158_p3), %v946_v1  ;;  %916 = vmatpush3.bf16.msra.mxu1 (!%p158_p3), %v946_v1 }
   0xd   : > { %918 = vmatprep.subr.msk.bf16.mxu0 (!%p158_p3), %vm316_vm0, %v947_v2  ;;  %919 = vmatprep.subr.msk.bf16.mxu1 (!%p158_p3), %vm316_vm0, %v947_v2 }
   0xe   : > { %s1321_s12 = smov (!%p189_p4, %s1034_s12), 1 }
   0xf   : > { %s861_s22 = sshll.u32 %s1321_s12, 6 }
  0x10   : > { %s197_s25 = scalar_lea.vmem %s1312_s0, %s861_s22  ;;  %895 = vmatpush3.bf16.msra.mxu0 %v318_v4  ;;  %917 = vmatpush3.bf16.msra.mxu1 %v318_v4  ;;  %s1222_s4 = scalar_lea.vmem %s1315_s3, %s861_s22 }
  0x11   : > { %v948_v3 = vld [vmem:[%s197_s25] sm:$0xff]   ;;  %v950_v6 = vld [vmem:[%s197_s25 + $0x8] sm:$0xff]   ;;  %v952_v8 = vld [vmem:[%s197_s25 + $0x10] sm:$0xff]  }
  0x12   : > { %v949_v5 = vld [vmem:[%s197_s25 + $0x20] sm:$0xff]   ;;  %896 = vmatprep.mubr.msk.bf16.mxu0 %vm291_vm1, %v948_v3  ;;  %v951_v7 = vld [vmem:[%s197_s25 + $0x28] sm:$0xff]   ;;  %v954_v9 = vld [vmem:[%s197_s25 + $0x30] sm:$0xff]  }
  0x13   : > { %904 = vmatprep.mubr.msk.bf16.mxu1 %vm291_vm1, %v949_v5  ;;  %897 = vmatmul.mubr.msk.bf16.vlgmr.msra.gmra.mrb[0].mxu0 %vm291_vm1, %v950_v6  ;;  %v953_v10 = vld [vmem:[%s197_s25 + $0x18] sm:$0xff]  }
  0x14   : > { %905 = vmatmul.mubr.msk.bf16.vlgmr.msra.gmra.mrb[0].mxu1 %vm291_vm1, %v951_v7  ;;  %900 = vmatprep.mubr.msk.bf16.mxu0 %vm291_vm1, %v952_v8  ;;  %v955_v11 = vld [vmem:[%s197_s25 + $0x38] sm:$0xff]  }
  0x15   : > { %908 = vmatprep.mubr.msk.bf16.mxu1 %vm291_vm1, %v954_v9 }
  0x1b   : > { %901 = vmatmul.mubr.msk.bf16.gmra.mrb[4].mxu0 %vm291_vm1, %v953_v10 }
  0x1c   : > { %909 = vmatmul.mubr.msk.bf16.gmra.mrb[4].mxu1 %vm291_vm1, %v955_v11 }
  0xe6   : > { %v898_v13 = vpop.f32.mrb[0].mxu0 }
  0xe7   : > { %v906_v14 = vpop.f32.mrb[0].mxu1  ;;  %v1111_v15 = vadd.f32 %v898_v13, %v807_v12  ;;  %v354_v17 = vpop.f32.mrb[1].mxu0 }
  0xe8   : > { %v1113_v16 = vadd.f32 %v906_v14, %v807_v12  ;;  %v386_v18 = vpop.f32.mrb[1].mxu1  ;;  %v899_v19 = vpop.f32.mrb[2].mxu0  ;;  %v1119_v23 = vadd.f32 %v807_v12, %v354_v17 }
  0xe9   : > { %v907_v20 = vpop.f32.mrb[2].mxu1  ;;  %421 = vrot.lane.b32.xlu1 %v1111_v15, %s1044_s28  ;;  %v357_v22 = vpop.f32.mrb[3].mxu0  ;;  %v1121_v24 = vadd.f32 %v899_v19, %v807_v12  ;;  %v1127_v27 = vadd.f32 %v807_v12, %v386_v18 }
  0xea   : > { %437 = vrot.lane.b32.xlu0 %v1113_v16, %s1044_s28  ;;  %v389_v21 = vpop.f32.mrb[3].mxu1  ;;  %v1129_v28 = vadd.f32 %v907_v20, %v807_v12  ;;  %v1137_v36 = vadd.f32 %v807_v12, %v357_v22 }
  0xeb   : > { %v1135_v35 = vadd.f32 %v807_v12, %v389_v21 }
  0xed   : > { %423 = vrot.lane.b32.xlu1 %v1121_v24, %s1044_s28 }
  0xee   : > { %417 = vrot.lane.b32.xlu0 %v1119_v23, %s1044_s28  ;;  %v902_v25 = vpop.f32.mrb[4].mxu0 }
  0xef   : > { %v910_v26 = vpop.f32.mrb[4].mxu1  ;;  %v370_v29 = vpop.f32.mrb[5].mxu0  ;;  %v1143_v37 = vadd.f32 %v902_v25, %v807_v12 }
  0xf0   : > { %v402_v30 = vpop.f32.mrb[5].mxu1  ;;  %v903_v31 = vpop.f32.mrb[6].mxu0  ;;  %v1151_v39 = vadd.f32 %v807_v12, %v370_v29  ;;  %v1167_v43 = vadd.f32 %v910_v26, %v807_v12 }
  0xf1   : > { %v911_v32 = vpop.f32.mrb[6].mxu1  ;;  %439 = vrot.lane.b32.xlu1 %v1129_v28, %s1044_s28  ;;  %v373_v33 = vpop.f32.mrb[7].mxu0  ;;  %v1145_v38 = vadd.f32 %v903_v31, %v807_v12  ;;  %v1159_v41 = vadd.f32 %v807_v12, %v402_v30 }
  0xf2   : > { %433 = vrot.lane.b32.xlu0 %v1127_v27, %s1044_s28  ;;  %v405_v34 = vpop.f32.mrb[7].mxu1  ;;  %v1153_v40 = vadd.f32 %v807_v12, %v373_v33  ;;  %v1169_v44 = vadd.f32 %v911_v32, %v807_v12 }
  0xf3   : > { %v1161_v42 = vadd.f32 %v807_v12, %v405_v34 }
  0xf5   : > { %435 = vrot.lane.b32.xlu1 %v1135_v35, %s1044_s28 }
  0xf6   : > { %419 = vrot.lane.b32.xlu0 %v1137_v36, %s1044_s28 }
  0xf9   : > { %431 = vrot.lane.b32.xlu1 %v1145_v38, %s1044_s28 }
  0xfa   : > { %429 = vrot.lane.b32.xlu0 %v1143_v37, %s1044_s28 }
  0xfd   : > { %427 = vrot.lane.b32.xlu1 %v1153_v40, %s1044_s28 }
  0xfe   : > { %425 = vrot.lane.b32.xlu0 %v1151_v39, %s1044_s28 }
 0x101   : > { %443 = vrot.lane.b32.xlu1 %v1161_v42, %s1044_s28 }
 0x102   : > { %441 = vrot.lane.b32.xlu0 %v1159_v41, %s1044_s28 }
 0x105   : > { %447 = vrot.lane.b32.xlu1 %v1169_v44, %s1044_s28 }
 0x106   : > { %445 = vrot.lane.b32.xlu0 %v1167_v43, %s1044_s28 }
 0x15b   : > { %v422_v46 = vpop.permute.xlu1 %421 }
 0x15c   : > { %v438_v45 = vpop.permute.xlu0 %437  ;;  %v451_v48 = vmul.f32 0.5, %v422_v46 }
 0x15d   : > { %v459_v47 = vmul.f32 0.5, %v438_v45 }
 0x15f   : > { %956 = vtanh.f32 %v459_v47  ;;  %v424_v49 = vpop.permute.xlu1 %423 }
 0x160   : > { %958 = vtanh.f32 %v451_v48  ;;  %v418_v50 = vpop.permute.xlu0 %417  ;;  %v452_v51 = vmul.f32 0.5, %v424_v49 }
 0x161   : > { %v449_v52 = vmul.f32 0.5, %v418_v50 }
 0x162   : > { %960 = vtanh.f32 %v452_v51 }
 0x163   : > { %962 = vtanh.f32 %v449_v52  ;;  %v440_v53 = vpop.permute.xlu1 %439 }
 0x164   : > { %v434_v54 = vpop.permute.xlu0 %433  ;;  %v460_v55 = vmul.f32 0.5, %v440_v53 }
 0x165   : > { %v457_v56 = vmul.f32 0.5, %v434_v54 }
 0x166   : > { %964 = vtanh.f32 %v460_v55 }
 0x167   : > { %966 = vtanh.f32 %v457_v56  ;;  %v436_v57 = vpop.permute.xlu1 %435 }
 0x168   : > { %v420_v58 = vpop.permute.xlu0 %419  ;;  %v458_v60 = vmul.f32 0.5, %v436_v57 }
 0x169   : > { %v957_v59 = vpop.eup %956  ;;  %v450_v61 = vmul.f32 0.5, %v420_v58 }
 0x16a   : > { %v959_v62 = vpop.eup %958  ;;  %v491_v63 = vmul.f32 0.5, %v957_v59  ;;  %968 = vtanh.f32 %v458_v60 }
 0x16b   : > { %v483_v0 = vmul.f32 0.5, %v959_v62  ;;  %970 = vtanh.f32 %v450_v61  ;;  %v432_v2 = vpop.permute.xlu1 %431 }
 0x16c   : > { %v507_v1 = vadd.f32 0.5, %v491_v63  ;;  %v430_v3 = vpop.permute.xlu0 %429  ;;  %v961_v4 = vpop.eup %960  ;;  %v456_v6 = vmul.f32 0.5, %v432_v2 }
 0x16d   : > { %v499_v5 = vadd.f32 0.5, %v483_v0  ;;  %v455_v7 = vmul.f32 0.5, %v430_v3  ;;  %v963_v8 = vpop.eup %962  ;;  %v484_v10 = vmul.f32 0.5, %v961_v4 }
 0x16e   : > { %v1176_v9 = vmul.f32 %v507_v1, %v1113_v16  ;;  %v481_v12 = vmul.f32 0.5, %v963_v8  ;;  %972 = vtanh.f32 %v456_v6 }
 0x16f   : > { %v1179_v11 = vmul.f32 %v499_v5, %v1111_v15  ;;  %v500_v14 = vadd.f32 0.5, %v484_v10  ;;  %974 = vtanh.f32 %v455_v7  ;;  %v428_v17 = vpop.permute.xlu1 %427 }
 0x170   : > { %v555_v13 = vmin.f32 %v1176_v9, 0.0  ;;  %v426_v18 = vpop.permute.xlu0 %425  ;;  %v965_v19 = vpop.eup %964  ;;  %v497_v21 = vadd.f32 0.5, %v481_v12  ;;  %v454_v22 = vmul.f32 0.5, %v428_v17  ;;  %vm539_vm3 = vcmp.gt.f32.partialorder %v1176_v9, 0.0 }
 0x171   : > { %v547_v20 = vmin.f32 %v1179_v11, 0.0  ;;  %v967_v25 = vpop.eup %966  ;;  %v1184_v26 = vmul.f32 %v500_v14, %v1121_v24  ;;  %v492_v15 = vmul.f32 0.5, %v965_v19  ;;  %v453_v29 = vmul.f32 0.5, %v426_v18 }
 0x172   : > { %v581_v16 = vmul.f32 1.442695, %v555_v13  ;;  %v1187_v31 = vmul.f32 %v497_v21, %v1119_v23  ;;  %v489_v32 = vmul.f32 0.5, %v967_v25  ;;  %976 = vtanh.f32 %v454_v22 }
 0x173   : > { %v565_v30 = vmul.f32 1.442695, %v547_v20  ;;  %v548_v33 = vmin.f32 %v1184_v26, 0.0  ;;  %v508_v34 = vadd.f32 0.5, %v492_v15  ;;  %v444_v45 = vpop.permute.xlu1 %443  ;;  %vm531_vm4 = vcmp.gt.f32.partialorder %v1179_v11, 0.0 }
 0x174   : > { %978 = vpow2.f32 %v581_v16  ;;  %v969_v46 = vpop.eup %968  ;;  %v545_v47 = vmin.f32 %v1187_v31, 0.0  ;;  %v505_v48 = vadd.f32 0.5, %v489_v32  ;;  %v462_v54 = vmul.f32 0.5, %v444_v45  ;;  %v442_v57 = vpop.permute.xlu0 %441 }
 0x175   : > { %980 = vpow2.f32 %v565_v30  ;;  %v971_v24 = vpop.eup %970  ;;  %v567_v49 = vmul.f32 1.442695, %v548_v33  ;;  %v1192_v50 = vmul.f32 %v508_v34, %v1129_v28  ;;  %v490_v51 = vmul.f32 0.5, %v969_v46 }
 0x176   : > { %982 = vtanh.f32 %v453_v29  ;;  %v561_v23 = vmul.f32 1.442695, %v545_v47  ;;  %v1195_v52 = vmul.f32 %v505_v48, %v1127_v27  ;;  %v482_v53 = vmul.f32 0.5, %v971_v24 }
 0x177   : > { %984 = vpow2.f32 %v567_v49  ;;  %v556_v55 = vmin.f32 %v1192_v50, 0.0  ;;  %v506_v56 = vadd.f32 0.5, %v490_v51  ;;  %v461_v2 = vmul.f32 0.5, %v442_v57  ;;  %v448_v21 = vpop.permute.xlu1 %447 }
 0x178   : > { %v973_v58 = vpop.eup %972  ;;  %986 = vpow2.f32 %v561_v23  ;;  %v553_v59 = vmin.f32 %v1195_v52, 0.0  ;;  %v498_v60 = vadd.f32 0.5, %v482_v53  ;;  %vm532_vm5 = vcmp.gt.f32.partialorder %v1184_v26, 0.0  ;;  %v446_v51 = vpop.permute.xlu0 %445 }
 0x179   : > { %v975_v28 = vpop.eup %974  ;;  %v583_v61 = vmul.f32 1.442695, %v556_v55  ;;  %v1200_v62 = vmul.f32 %v506_v56, %v1135_v35  ;;  %v488_v63 = vmul.f32 0.5, %v973_v58  ;;  %988 = vtanh.f32 %v462_v54 }
 0x17a   : > { %v577_v27 = vmul.f32 1.442695, %v553_v59  ;;  %v1203_v0 = vmul.f32 %v498_v60, %v1137_v36  ;;  %v487_v1 = vmul.f32 0.5, %v975_v28  ;;  %vm529_vm6 = vcmp.gt.f32.partialorder %v1187_v31, 0.0 }
 0x17b   : > { %990 = vpow2.f32 %v583_v61  ;;  %v554_v3 = vmin.f32 %v1200_v62, 0.0  ;;  %v504_v4 = vadd.f32 0.5, %v488_v63  ;;  %v464_v48 = vmul.f32 0.5, %v448_v21 }
 0x17c   : > { %v977_v5 = vpop.eup %976  ;;  %992 = vpow2.f32 %v577_v27  ;;  %v546_v35 = vmin.f32 %v1203_v0, 0.0  ;;  %v503_v6 = vadd.f32 0.5, %v487_v1  ;;  %vm540_vm7 = vcmp.gt.f32.partialorder %v1192_v50, 0.0 }
 0x17d   : > { %v579_v8 = vmul.f32 1.442695, %v554_v3  ;;  %v1209_v36 = vmul.f32 %v504_v4, %v1145_v38  ;;  %v486_v10 = vmul.f32 0.5, %v977_v5  ;;  %994 = vtanh.f32 %v461_v2 }
 0x17e   : > { %v979_v7 = vpop.eup %978  ;;  %v563_v14 = vmul.f32 1.442695, %v546_v35  ;;  %v1213_v17 = vmul.f32 %v503_v6, %v1143_v37  ;;  %v463_v61 = vmul.f32 0.5, %v446_v51  ;;  %vm537_vm8 = vcmp.gt.f32.partialorder %v1195_v52, 0.0 }
 0x17f   : > { %v981_v12 = vpop.eup %980  ;;  %v837_v13 = vadd.f32 -1.0, %v979_v7  ;;  %996 = vpow2.f32 %v579_v8  ;;  %v552_v20 = vmin.f32 %v1209_v36, 0.0  ;;  %v502_v29 = vadd.f32 0.5, %v486_v10 }
 0x180   : > { %v983_v18 = vpop.eup %982  ;;  %v829_v19 = vadd.f32 -1.0, %v981_v12  ;;  %998 = vpow2.f32 %v563_v14  ;;  %v551_v37 = vmin.f32 %v1213_v17, 0.0  ;;  %vm538_vm9 = vcmp.gt.f32.partialorder %v1200_v62, 0.0 }
 0x181   : > { %v619_v38 = vsel %vm539_vm3, %v1176_v9, %v837_v13  ;;  %v985_v22 = vpop.eup %984  ;;  %v575_v15 = vmul.f32 1.442695, %v552_v20  ;;  %v485_v34 = vmul.f32 0.5, %v983_v18  ;;  %v1235_v47 = vmul.f32 %v502_v29, %v1153_v40 }
 0x182   : > { %v873_v25 = vpack.c.bf16 %v619_v38, %v619_v38  ;;  %v611_v16 = vsel %vm531_vm4, %v1179_v11, %v829_v19  ;;  %v987_v30 = vpop.eup %986  ;;  %v830_v33 = vadd.f32 -1.0, %v985_v22  ;;  %v573_v9 = vmul.f32 1.442695, %v551_v37 }
 0x183   : > { %v865_v32 = vpack.c.bf16 %v611_v16, %v611_v16  ;;  %v989_v45 = vpop.eup %988  ;;  %v827_v46 = vadd.f32 -1.0, %v987_v30  ;;  %1000 = vpow2.f32 %v575_v15  ;;  %v501_v24 = vadd.f32 0.5, %v485_v34 }
 0x184   : > { %700 = vst.msk [vmem:[%s1222_s4 + $0x28] sm:$0xf] %vm689_vm2, %v873_v25  ;;  %v612_v11 = vsel %vm532_vm5, %v1184_v26, %v830_v33  ;;  %1002 = vpow2.f32 %v573_v9  ;;  %v494_v49 = vmul.f32 0.5, %v989_v45  ;;  %v550_v54 = vmin.f32 %v1235_v47, 0.0 }
 0x185   : > { %692 = vst.msk [vmem:[%s1222_s4 + $0x8] sm:$0xf] %vm689_vm2, %v865_v32  ;;  %v991_v23 = vpop.eup %990  ;;  %v866_v53 = vpack.c.bf16 %v612_v11, %v612_v11  ;;  %v609_v40 = vsel %vm529_vm6, %v1187_v31, %v827_v46  ;;  %v1248_v26 = vmul.f32 %v501_v24, %v1151_v39  ;;  %1004 = vtanh.f32 %v464_v48 }
 0x186   : > { %v993_v55 = vpop.eup %992  ;;  %v863_v56 = vpack.c.bf16 %v609_v40, %v609_v40  ;;  %v838_v57 = vadd.f32 -1.0, %v991_v23  ;;  %v510_v58 = vadd.f32 0.5, %v494_v49  ;;  %v571_v28 = vmul.f32 1.442695, %v550_v54 }
 0x187   : > { %v995_v59 = vpop.eup %994  ;;  %693 = vst.msk [vmem:[%s1222_s4 + $0xc] sm:$0xf] %vm689_vm2, %v866_v53  ;;  %v835_v60 = vadd.f32 -1.0, %v993_v55  ;;  %v549_v63 = vmin.f32 %v1248_v26, 0.0  ;;  %vm530_vm10 = vcmp.gt.f32.partialorder %v1203_v0, 0.0  ;;  %vm536_vm11 = vcmp.gt.f32.partialorder %v1209_v36, 0.0 }
 0x188   : > { %690 = vst.msk [vmem:[%s1222_s4] sm:$0xf] %vm689_vm2, %v863_v56  ;;  %v620_v31 = vsel %vm540_vm7, %v1192_v50, %v838_v57  ;;  %v1258_v39 = vmul.f32 %v510_v58, %v1161_v42  ;;  %1006 = vpow2.f32 %v571_v28  ;;  %v493_v3 = vmul.f32 0.5, %v995_v59 }
 0x189   : > { %v997_v27 = vpop.eup %996  ;;  %v874_v1 = vpack.c.bf16 %v620_v31, %v620_v31  ;;  %v617_v2 = vsel %vm537_vm8, %v1195_v52, %v835_v60  ;;  %v569_v50 = vmul.f32 1.442695, %v549_v63  ;;  %1008 = vtanh.f32 %v463_v61 }
 0x18a   : > { %v999_v4 = vpop.eup %998  ;;  %v871_v5 = vpack.c.bf16 %v617_v2, %v617_v2  ;;  %v836_v35 = vadd.f32 -1.0, %v997_v27  ;;  %v558_v42 = vmin.f32 %v1258_v39, 0.0  ;;  %v509_v7 = vadd.f32 0.5, %v493_v3 }
 0x18b   : > { %701 = vst.msk [vmem:[%s1222_s4 + $0x2c] sm:$0xf] %vm689_vm2, %v874_v1  ;;  %v828_v6 = vadd.f32 -1.0, %v999_v4  ;;  %1010 = vpow2.f32 %v569_v50  ;;  %vm535_vm12 = vcmp.gt.f32.partialorder %v1213_v17, 0.0  ;;  %vm534_vm13 = vcmp.gt.f32.partialorder %v1235_v47, 0.0 }
 0x18c   : > { %698 = vst.msk [vmem:[%s1222_s4 + $0x20] sm:$0xf] %vm689_vm2, %v871_v5  ;;  %v618_v52 = vsel %vm538_vm9, %v1200_v62, %v836_v35  ;;  %v587_v13 = vmul.f32 1.442695, %v558_v42  ;;  %v525_v14 = vmul.f32 %v509_v7, %v1159_v41  ;;  %vm533_vm14 = vcmp.gt.f32.partialorder %v1248_v26, 0.0 }
 0x18d   : > { %v1001_v8 = vpop.eup %1000  ;;  %v872_v10 = vpack.c.bf16 %v618_v52, %v618_v52  ;;  %v610_v12 = vsel %vm530_vm10, %v1203_v0, %v828_v6  ;;  %vm542_vm15 = vcmp.gt.f32.partialorder %v1258_v39, 0.0 }
 0x18e   : > { %v1003_v18 = vpop.eup %1002  ;;  %v864_v19 = vpack.c.bf16 %v610_v12, %v610_v12  ;;  %v834_v20 = vadd.f32 -1.0, %v1001_v8  ;;  %1012 = vpow2.f32 %v587_v13  ;;  %v557_v38 = vmin.f32 %v525_v14, 0.0 }
 0x18f   : > { %699 = vst.msk [vmem:[%s1222_s4 + $0x24] sm:$0xf] %vm689_vm2, %v872_v10  ;;  %v833_v62 = vadd.f32 -1.0, %v1003_v18  ;;  %v1005_v0 = vpop.eup %1004  ;;  %vm541_vm0 = vcmp.gt.f32.partialorder %v525_v14, 0.0 }
 0x190   : > { %691 = vst.msk [vmem:[%s1222_s4 + $0x4] sm:$0xf] %vm689_vm2, %v864_v19  ;;  %v616_v37 = vsel %vm536_vm11, %v1209_v36, %v834_v20  ;;  %v585_v22 = vmul.f32 1.442695, %v557_v38  ;;  %v496_v16 = vmul.f32 0.5, %v1005_v0 }
 0x191   : > { %v870_v41 = vpack.c.bf16 %v616_v37, %v616_v37  ;;  %v615_v21 = vsel %vm535_vm12, %v1213_v17, %v833_v62 }
 0x192   : > { %v869_v25 = vpack.c.bf16 %v615_v21, %v615_v21  ;;  %v1007_v15 = vpop.eup %1006  ;;  %1014 = vpow2.f32 %v585_v22  ;;  %v512_v30 = vadd.f32 0.5, %v496_v16 }
 0x193   : > { %697 = vst.msk [vmem:[%s1222_s4 + $0x1c] sm:$0xf] %vm689_vm2, %v870_v41  ;;  %v832_v29 = vadd.f32 -1.0, %v1007_v15  ;;  %v1009_v32 = vpop.eup %1008 }
 0x194   : > { %696 = vst.msk [vmem:[%s1222_s4 + $0x18] sm:$0xf] %vm689_vm2, %v869_v25  ;;  %v528_v17 = vmul.f32 %v512_v30, %v1169_v44  ;;  %v495_v9 = vmul.f32 0.5, %v1009_v32 }
 0x195   : > { %v1011_v36 = vpop.eup %1010  ;;  %v614_v33 = vsel %vm534_vm13, %v1235_v47, %v832_v29 }
 0x196   : > { %v868_v34 = vpack.c.bf16 %v614_v33, %v614_v33  ;;  %v831_v45 = vadd.f32 -1.0, %v1011_v36  ;;  %v560_v46 = vmin.f32 %v528_v17, 0.0  ;;  %v511_v48 = vadd.f32 0.5, %v495_v9 }
 0x197   : > { %vm544_vm1 = vcmp.gt.f32.partialorder %v528_v17, 0.0 }
 0x198   : > { %v1013_v11 = vpop.eup %1012  ;;  %695 = vst.msk [vmem:[%s1222_s4 + $0x14] sm:$0xf] %vm689_vm2, %v868_v34  ;;  %v613_v24 = vsel %vm533_vm14, %v1248_v26, %v831_v45  ;;  %v591_v23 = vmul.f32 1.442695, %v560_v46  ;;  %v527_v47 = vmul.f32 %v511_v48, %v1167_v43 }
 0x199   : > { %v867_v49 = vpack.c.bf16 %v613_v24, %v613_v24  ;;  %v840_v51 = vadd.f32 -1.0, %v1013_v11 }
 0x19a   : > { %1016 = vpow2.f32 %v591_v23  ;;  %v559_v53 = vmin.f32 %v527_v47, 0.0  ;;  %vm543_vm3 = vcmp.gt.f32.partialorder %v527_v47, 0.0 }
 0x19b   : > { %694 = vst.msk [vmem:[%s1222_s4 + $0x10] sm:$0xf] %vm689_vm2, %v867_v49  ;;  %v622_v44 = vsel %vm542_vm15, %v1258_v39, %v840_v51 }
 0x19c   : > { %v1015_v40 = vpop.eup %1014  ;;  %v876_v54 = vpack.c.bf16 %v622_v44, %v622_v44  ;;  %v589_v56 = vmul.f32 1.442695, %v559_v53 }
 0x19d   : > { %v839_v55 = vadd.f32 -1.0, %v1015_v40 }
 0x19e   : > { %703 = vst.msk [vmem:[%s1222_s4 + $0x34] sm:$0xf] %vm689_vm2, %v876_v54  ;;  %1018 = vpow2.f32 %v589_v56 }
 0x19f   : > { %v621_v57 = vsel %vm541_vm0, %v525_v14, %v839_v55 }
 0x1a0   : > { %v875_v43 = vpack.c.bf16 %v621_v57, %v621_v57 }
 0x1a2   : > { %702 = vst.msk [vmem:[%s1222_s4 + $0x30] sm:$0xf] %vm689_vm2, %v875_v43 }
 0x1a4   : > { %v1017_v26 = vpop.eup %1016 }
 0x1a5   : > { %v842_v58 = vadd.f32 -1.0, %v1017_v26 }
 0x1a7   : > { %v624_v59 = vsel %vm544_vm1, %v528_v17, %v842_v58 }
 0x1a8   : > { %v1019_v60 = vpop.eup %1018  ;;  %v878_v28 = vpack.c.bf16 %v624_v59, %v624_v59 }
 0x1a9   : > { %v841_v61 = vadd.f32 -1.0, %v1019_v60 }
 0x1aa   : > { %705 = vst.msk [vmem:[%s1222_s4 + $0x3c] sm:$0xf] %vm689_vm2, %v878_v28 }
 0x1ab   : > { %v623_v31 = vsel %vm543_vm3, %v527_v47, %v841_v61 }
 0x1ac   : > { %v877_v63 = vpack.c.bf16 %v623_v31, %v623_v31 }
 0x1ae   : > { %704 = vst.msk [vmem:[%s1222_s4 + $0x38] sm:$0xf] %vm689_vm2, %v877_v63 }
 0x1af PF: > { %s13_s14 = sadd.s32 1, %s1042_s14   ;;  %s1316_s12 = smov %s1038_s13 }
 0x1b0   : > { %p10_p5 = scmp.ge.s32.totalorder %s13_s14, 4   ;;  %s1317_s13 = smov %s1319_s15 }
 0x1b2   :  { %12 = sbr.rel (!%p10_p5) target bundleno = 2 (0x2), region = 62 }

</bundles_post_ra>
